<compile_context>
chip_gen: v5e
topology: v5e:2x2
jax: 0.10.0
libtpu: 0.0.40
codegen_flags: <defaults>
</compile_context>

<pallas_src>
import functools

import jax
import jax.numpy as jnp
from jax.experimental import pallas as pl
from jax.experimental.pallas import tpu as pltpu

TN = 2048         # points (lanes) per grid step; multiple of 128, sweep 2048-8192
HIDDEN = 32       # synthetic decoder hidden width


def _mainmlp_kernel(head_dim,
                    p_ref, scale_ref, off_ref,
                    w1t_ref, b1_ref, w2t_ref, b2_ref, wht_ref, bh_ref,
                    out_ref):
    # p_ref: (3, TN) channel-major points; out_ref: (3+head_dim+1, TN) slab.
    p = p_ref[...]
    scale = scale_ref[0, 0]                       # 2 / max(grid_size), from SMEM

    # noc = (p - min_bound) * (2/max_v) - 1  ==  p*scale + off   (FMA, no divide)
    noc = p * scale + off_ref[...]                # (3, TN)
    out_ref[0:3, :] = noc

    # validity: all three coords inside [-1, 1] (lane-dense VPU compare/and)
    x0 = noc[0:1, :]
    x1 = noc[1:2, :]
    x2 = noc[2:3, :]
    valid = ((x0 >= -1.0) & (x0 <= 1.0)
             & (x1 >= -1.0) & (x1 <= 1.0)
             & (x2 >= -1.0) & (x2 <= 1.0))        # (1, TN) bool
    out_ref[3 + head_dim:4 + head_dim, :] = jnp.where(valid, 1.0, 0.0)

    # synthetic sdf_decoder MLP, channel-major (weights pre-transposed in wrapper)
    h = jnp.dot(w1t_ref[...], noc, preferred_element_type=jnp.float32) + b1_ref[...]
    h = jnp.maximum(h, 0.0)
    h = jnp.dot(w2t_ref[...], h, preferred_element_type=jnp.float32) + b2_ref[...]
    h = jnp.maximum(h, 0.0)
    head = jnp.dot(wht_ref[...], h, preferred_element_type=jnp.float32) + bh_ref[...]
    out_ref[3:3 + head_dim, :] = head             # [sdf] or [sdf, rgb(3)]


def _round_up(x, m):
    return (x + m - 1) // m * m


def mainmlp_forward(p, scene_data, *, normalize=True, use_stage=True, stage='color'):
    """Pallas implementation of MainMLP.forward (deform=False, sigma_only=False)."""
    assert p.ndim == 2 and p.shape[1] == 3
    N = p.shape[0]

    min_bound = scene_data['min_bound'].astype(jnp.float32)     # (1, 3)
    grid_size = scene_data['grid_size'].astype(jnp.float32)     # (1, 3)

    model = scene_data['model']
    w1, b1 = model['w1'], model['b1']             # (3, H), (1, H)
    w2, b2 = model['w2'], model['b2']             # (H, H), (1, H)
    w3s, b3s = model['w3_sdf'], model['b3_sdf']   # (H, 1), (1, 1)
    w3c, b3c = model['w3_rgb'], model['b3_rgb']   # (H, 3), (1, 3)
    H = w1.shape[1]

    zero_rgb = bool(use_stage and stage in ('middle', 'fine'))
    head_dim = 1 if zero_rgb else 4               # [sdf] or [sdf, rgb]
    out_rows = 3 + head_dim + 1                   # noc(3) + head + valid(1)

    # --- normalization affine precomputed in the wrapper: noc = p*scale + off ---
    max_v = jnp.max(grid_size)
    if normalize:
        scale = (2.0 / max_v).reshape(1, 1).astype(jnp.float32)            # (1, 1)
        off = (-(min_bound.T * (2.0 / max_v)) - 1.0).astype(jnp.float32)   # (3, 1)
    else:
        scale = jnp.ones((1, 1), jnp.float32)
        off = jnp.zeros((3, 1), jnp.float32)

    # --- channel-major weights (transpose/fuse once in the wrapper) ---
    w1t = w1.T.astype(jnp.float32)                # (H, 3)
    b1c = b1.reshape(H, 1).astype(jnp.float32)    # (H, 1)
    w2t = w2.T.astype(jnp.float32)                # (H, H)
    b2c = b2.reshape(H, 1).astype(jnp.float32)    # (H, 1)
    if zero_rgb:
        wht = w3s.T.astype(jnp.float32)                                    # (1, H)
        bhc = b3s.reshape(1, 1).astype(jnp.float32)                        # (1, 1)
    else:
        wht = jnp.concatenate([w3s, w3c], axis=1).T.astype(jnp.float32)    # (4, H)
        bhc = jnp.concatenate([b3s, b3c], axis=1).reshape(4, 1).astype(jnp.float32)

    # --- channel-major, lane-padded points (pad rows are sliced off afterwards) ---
    n_pad = _round_up(max(N, 1), 128)
    tn = min(TN, n_pad)
    n_pad = _round_up(n_pad, tn)
    p_t = jnp.zeros((3, n_pad), jnp.float32).at[:, :N].set(p.T.astype(jnp.float32))

    grid = (n_pad // tn,)
    kernel = functools.partial(_mainmlp_kernel, head_dim)

    in_specs = [
        pl.BlockSpec((3, tn), lambda i: (0, i)),                 # p (channel-major)
        pl.BlockSpec(memory_space=pltpu.MemorySpace.SMEM),       # scale (scalar)
        pl.BlockSpec((3, 1), lambda i: (0, 0)),                  # off (3,1)
        pl.BlockSpec((H, 3), lambda i: (0, 0)),                  # w1^T
        pl.BlockSpec((H, 1), lambda i: (0, 0)),                  # b1
        pl.BlockSpec((H, H), lambda i: (0, 0)),                  # w2^T
        pl.BlockSpec((H, 1), lambda i: (0, 0)),                  # b2
        pl.BlockSpec((head_dim, H), lambda i: (0, 0)),           # fused head^T
        pl.BlockSpec((head_dim, 1), lambda i: (0, 0)),           # fused head bias
    ]
    out_specs = pl.BlockSpec((out_rows, tn), lambda i: (0, i))
    out_shape = jax.ShapeDtypeStruct((out_rows, n_pad), jnp.float32)

    packed = pl.pallas_call(
        kernel,
        out_shape=out_shape,
        grid_spec=pltpu.PrefetchScalarGridSpec(
            num_scalar_prefetch=0,
            grid=grid,
            in_specs=in_specs,
            out_specs=out_specs,
        ),
        compiler_params=pltpu.CompilerParams(
            dimension_semantics=("parallel",)),     # shards the grid on v7x's 2 TCs
    )(p_t, scale, off, w1t, b1c, w2t, b2c, wht, bhc)

    packed = packed[:, :N]
    noc_p = packed[0:3, :].T                       # (N, 3)
    raw = packed[3:4, :].T                         # (N, 1)
    if zero_rgb:
        rgb = jnp.zeros((N, 3), jnp.float32)       # never computed/written by kernel
    else:
        rgb = packed[4:7, :].T                     # (N, 3)
    valid = packed[out_rows - 1, :] > 0.5          # (N,) bool

    # deform=False path: p_shift is None, tx_noc_p == noc_p; vdirs/motion_net/p_tidx unused.
    # TODO(synk): motion_net.apply_deform_batch / get_time_code / use_bending paths
    # (deform=True, append_t=True) are external modules and are not implemented here.
    return {
        'sigma': raw,
        'raw': raw,
        'rgb': rgb,
        'normal': None,
        'p_shift': None,
        '_valid': valid,
        '_noc_p': noc_p,
        '_tx_noc_p': noc_p,
    }


def _reference_forward(p, scene_data, normalize=True, use_stage=True, stage='color'):
    """Pure-JAX reference mirroring the PyTorch forward (deform=False)."""
    min_bound = scene_data['min_bound']
    grid_size = scene_data['grid_size']
    if normalize:
        max_v = jnp.max(grid_size)
        noc_p = (p - min_bound) / max_v * 2.0 - 1.0
    else:
        noc_p = p
    inside = jnp.logical_and(noc_p >= -1.0, noc_p <= 1.0).astype(jnp.int32)
    va = jnp.sum(inside, axis=-1) == 3
    m = scene_data['model']
    h = jnp.maximum(noc_p @ m['w1'] + m['b1'], 0.0)
    h = jnp.maximum(h @ m['w2'] + m['b2'], 0.0)
    raw = h @ m['w3_sdf'] + m['b3_sdf']
    if use_stage and stage in ('middle', 'fine'):
        rgb = jnp.zeros((raw.shape[0], 3), jnp.float32)
    else:
        rgb = h @ m['w3_rgb'] + m['b3_rgb']
    return noc_p, raw, rgb, va


if __name__ == "__main__":
    key = jax.random.PRNGKey(0)
    k_p, k1, k2, k3, k4 = jax.random.split(key, 5)

    H = HIDDEN
    min_bound = jnp.array([[-2.0, -2.0, -2.0]], dtype=jnp.float32)
    grid_size = jnp.array([[4.0, 4.0, 4.0]], dtype=jnp.float32)
    model = {
        'w1': 0.5 * jax.random.normal(k1, (3, H), jnp.float32),
        'b1': jnp.zeros((1, H), jnp.float32),
        'w2': (1.0 / jnp.sqrt(H)) * jax.random.normal(k2, (H, H), jnp.float32),
        'b2': jnp.zeros((1, H), jnp.float32),
        'w3_sdf': (1.0 / jnp.sqrt(H)) * jax.random.normal(k3, (H, 1), jnp.float32),
        'b3_sdf': jnp.zeros((1, 1), jnp.float32),
        'w3_rgb': (1.0 / jnp.sqrt(H)) * jax.random.normal(k4, (H, 3), jnp.float32),
        'b3_rgb': jnp.zeros((1, 3), jnp.float32),
    }
    scene_data = {'model': model, 'grid_size': grid_size, 'min_bound': min_bound}

    # Case 1: stage='color' (rgb head active), N a multiple of 128.
    N = 256
    p = jax.random.uniform(k_p, (N, 3), jnp.float32, minval=-3.0, maxval=3.0)
    out = mainmlp_forward(p, scene_data, normalize=True, use_stage=True, stage='color')
    jax.block_until_ready(out['raw'])
    jax.block_until_ready(out['rgb'])
    jax.block_until_ready(out['_valid'])

    noc_ref, raw_ref, rgb_ref, va_ref = _reference_forward(p, scene_data, stage='color')
    assert jnp.allclose(out['_noc_p'], noc_ref, atol=1e-5)
    assert jnp.allclose(out['raw'], raw_ref, atol=1e-4)
    assert jnp.allclose(out['rgb'], rgb_ref, atol=1e-4)
    assert bool(jnp.all(out['_valid'] == va_ref))

    # Case 2: stage='middle' (rgb statically zero, no rgb rows written by the
    # kernel), N NOT a multiple of 128 -> exercises lane padding/unpadding.
    N2 = 200
    p2 = jax.random.uniform(k_p, (N2, 3), jnp.float32, minval=-3.0, maxval=3.0)
    out2 = mainmlp_forward(p2, scene_data, normalize=True, use_stage=True, stage='middle')
    jax.block_until_ready(out2['raw'])

    noc_ref2, raw_ref2, rgb_ref2, va_ref2 = _reference_forward(p2, scene_data, stage='middle')
    assert jnp.allclose(out2['_noc_p'], noc_ref2, atol=1e-5)
    assert jnp.allclose(out2['raw'], raw_ref2, atol=1e-4)
    assert jnp.allclose(out2['rgb'], rgb_ref2, atol=1e-4)
    assert bool(jnp.all(out2['_valid'] == va_ref2))

    print("KERNEL_OK")
</pallas_src>

<mosaic_0001>
module attributes {stable_mosaic.version = 11 : i64} {
  func.func @_mainmlp_kernel(%arg0: i32, %arg1: memref<3x256xf32, #tpu.memory_space<vmem>>, %arg2: memref<1x1xf32, #tpu.memory_space<smem>>, %arg3: memref<3x1xf32, #tpu.memory_space<vmem>>, %arg4: memref<32x3xf32, #tpu.memory_space<vmem>>, %arg5: memref<32x1xf32, #tpu.memory_space<vmem>>, %arg6: memref<32x32xf32, #tpu.memory_space<vmem>>, %arg7: memref<32x1xf32, #tpu.memory_space<vmem>>, %arg8: memref<4x32xf32, #tpu.memory_space<vmem>>, %arg9: memref<4x1xf32, #tpu.memory_space<vmem>>, %arg10: memref<8x256xf32, #tpu.memory_space<vmem>>) attributes {dimension_semantics = [#tpu.dimension_semantics<parallel>], iteration_bounds = array<i64: 1>, scalar_prefetch = 0 : i64, scratch_operands = 0 : i64, tpu.core_type = #tpu.core_type<tc>, window_params = [{transform_indices = @transform_0, window_bounds = array<i64: 3, 256>}, {transform_indices = @transform_1, window_bounds = array<i64: 1, 1>}, {pipeline_mode = #tpu.pipeline_mode<synchronous>, transform_indices = @transform_2, window_bounds = array<i64: 3, 1>}, {pipeline_mode = #tpu.pipeline_mode<synchronous>, transform_indices = @transform_3, window_bounds = array<i64: 32, 3>}, {pipeline_mode = #tpu.pipeline_mode<synchronous>, transform_indices = @transform_4, window_bounds = array<i64: 32, 1>}, {pipeline_mode = #tpu.pipeline_mode<synchronous>, transform_indices = @transform_5, window_bounds = array<i64: 32, 32>}, {pipeline_mode = #tpu.pipeline_mode<synchronous>, transform_indices = @transform_6, window_bounds = array<i64: 32, 1>}, {pipeline_mode = #tpu.pipeline_mode<synchronous>, transform_indices = @transform_7, window_bounds = array<i64: 4, 32>}, {pipeline_mode = #tpu.pipeline_mode<synchronous>, transform_indices = @transform_8, window_bounds = array<i64: 4, 1>}, {transform_indices = @transform_9, window_bounds = array<i64: 8, 256>}]} {
    %c0 = arith.constant 0 : index
    %c0_0 = arith.constant 0 : index
    %0 = vector.load %arg1[%c0, %c0_0] : memref<3x256xf32, #tpu.memory_space<vmem>>, vector<3x256xf32>
    %c0_1 = arith.constant 0 : index
    %c0_2 = arith.constant 0 : index
    %1 = memref.load %arg2[%c0_1, %c0_2] : memref<1x1xf32, #tpu.memory_space<smem>>
    %2 = vector.broadcast %1 : f32 to vector<3x256xf32>
    %3 = arith.mulf %0, %2 : vector<3x256xf32>
    %c0_3 = arith.constant 0 : index
    %c0_4 = arith.constant 0 : index
    %4 = vector.load %arg3[%c0_3, %c0_4] : memref<3x1xf32, #tpu.memory_space<vmem>>, vector<3x1xf32>
    %5 = vector.broadcast %4 : vector<3x1xf32> to vector<3x256xf32>
    %6 = arith.addf %3, %5 : vector<3x256xf32>
    %c0_5 = arith.constant 0 : index
    %c0_6 = arith.constant 0 : index
    %7 = vector.load %arg10[%c0_5, %c0_6] : memref<8x256xf32, #tpu.memory_space<vmem>>, vector<3x256xf32>
    tpu.vector_store %arg10[%c0_5, %c0_6], %6 {strides = array<i32>} : memref<8x256xf32, #tpu.memory_space<vmem>>, vector<3x256xf32>,
    %8 = vector.extract_strided_slice %6 {offsets = [0, 0], sizes = [1, 256], strides = [1, 1]} : vector<3x256xf32> to vector<1x256xf32>
    %9 = vector.extract_strided_slice %6 {offsets = [1, 0], sizes = [1, 256], strides = [1, 1]} : vector<3x256xf32> to vector<1x256xf32>
    %10 = vector.extract_strided_slice %6 {offsets = [2, 0], sizes = [1, 256], strides = [1, 1]} : vector<3x256xf32> to vector<1x256xf32>
    %cst = arith.constant -1.000000e+00 : f32
    %11 = vector.broadcast %cst : f32 to vector<1x256xf32>
    %12 = arith.cmpf oge, %8, %11 : vector<1x256xf32>
    %cst_7 = arith.constant 1.000000e+00 : f32
    %13 = vector.broadcast %cst_7 : f32 to vector<1x256xf32>
    %14 = arith.cmpf ole, %8, %13 : vector<1x256xf32>
    %15 = arith.andi %12, %14 : vector<1x256xi1>
    %cst_8 = arith.constant -1.000000e+00 : f32
    %16 = vector.broadcast %cst_8 : f32 to vector<1x256xf32>
    %17 = arith.cmpf oge, %9, %16 : vector<1x256xf32>
    %18 = arith.andi %15, %17 : vector<1x256xi1>
    %cst_9 = arith.constant 1.000000e+00 : f32
    %19 = vector.broadcast %cst_9 : f32 to vector<1x256xf32>
    %20 = arith.cmpf ole, %9, %19 : vector<1x256xf32>
    %21 = arith.andi %18, %20 : vector<1x256xi1>
    %cst_10 = arith.constant -1.000000e+00 : f32
    %22 = vector.broadcast %cst_10 : f32 to vector<1x256xf32>
    %23 = arith.cmpf oge, %10, %22 : vector<1x256xf32>
    %24 = arith.andi %21, %23 : vector<1x256xi1>
    %cst_11 = arith.constant 1.000000e+00 : f32
    %25 = vector.broadcast %cst_11 : f32 to vector<1x256xf32>
    %26 = arith.cmpf ole, %10, %25 : vector<1x256xf32>
    %27 = arith.andi %24, %26 : vector<1x256xi1>
    %cst_12 = arith.constant 1.000000e+00 : f32
    %cst_13 = arith.constant 0.000000e+00 : f32
    %28 = vector.broadcast %cst_12 : f32 to vector<1x256xf32>
    %29 = vector.broadcast %cst_13 : f32 to vector<1x256xf32>
    %30 = arith.select %27, %28, %29 : vector<1x256xi1>, vector<1x256xf32>
    %c7 = arith.constant 7 : index
    %c0_14 = arith.constant 0 : index
    %31 = vector.load %arg10[%c7, %c0_14] : memref<8x256xf32, #tpu.memory_space<vmem>>, vector<1x256xf32>
    tpu.vector_store %arg10[%c7, %c0_14], %30 {strides = array<i32>} : memref<8x256xf32, #tpu.memory_space<vmem>>, vector<1x256xf32>,
    %c0_15 = arith.constant 0 : index
    %c0_16 = arith.constant 0 : index
    %32 = vector.load %arg4[%c0_15, %c0_16] : memref<32x3xf32, #tpu.memory_space<vmem>>, vector<32x3xf32>
    %cst_17 = arith.constant dense<0.000000e+00> : vector<32x256xf32>
    %33 = tpu.matmul %32, %6, %cst_17 {dimension_numbers = #tpu.dot_dimension_numbers<[1], [0], [0], [1], [0, 0, 1, 1], [], []>} : vector<32x3xf32>, vector<3x256xf32>, vector<32x256xf32> -> vector<32x256xf32>
    %c0_18 = arith.constant 0 : index
    %c0_19 = arith.constant 0 : index
    %34 = vector.load %arg5[%c0_18, %c0_19] : memref<32x1xf32, #tpu.memory_space<vmem>>, vector<32x1xf32>
    %35 = vector.broadcast %34 : vector<32x1xf32> to vector<32x256xf32>
    %36 = arith.addf %33, %35 : vector<32x256xf32>
    %cst_20 = arith.constant 0.000000e+00 : f32
    %37 = vector.broadcast %cst_20 : f32 to vector<32x256xf32>
    %38 = arith.maximumf %36, %37 : vector<32x256xf32>
    %c0_21 = arith.constant 0 : index
    %c0_22 = arith.constant 0 : index
    %39 = vector.load %arg6[%c0_21, %c0_22] : memref<32x32xf32, #tpu.memory_space<vmem>>, vector<32x32xf32>
    %cst_23 = arith.constant dense<0.000000e+00> : vector<32x256xf32>
    %40 = tpu.matmul %39, %38, %cst_23 {dimension_numbers = #tpu.dot_dimension_numbers<[1], [0], [0], [1], [0, 0, 1, 1], [], []>} : vector<32x32xf32>, vector<32x256xf32>, vector<32x256xf32> -> vector<32x256xf32>
    %c0_24 = arith.constant 0 : index
    %c0_25 = arith.constant 0 : index
    %41 = vector.load %arg7[%c0_24, %c0_25] : memref<32x1xf32, #tpu.memory_space<vmem>>, vector<32x1xf32>
    %42 = vector.broadcast %41 : vector<32x1xf32> to vector<32x256xf32>
    %43 = arith.addf %40, %42 : vector<32x256xf32>
    %cst_26 = arith.constant 0.000000e+00 : f32
    %44 = vector.broadcast %cst_26 : f32 to vector<32x256xf32>
    %45 = arith.maximumf %43, %44 : vector<32x256xf32>
    %c0_27 = arith.constant 0 : index
    %c0_28 = arith.constant 0 : index
    %46 = vector.load %arg8[%c0_27, %c0_28] : memref<4x32xf32, #tpu.memory_space<vmem>>, vector<4x32xf32>
    %cst_29 = arith.constant dense<0.000000e+00> : vector<4x256xf32>
    %47 = tpu.matmul %46, %45, %cst_29 {dimension_numbers = #tpu.dot_dimension_numbers<[1], [0], [0], [1], [0, 0, 1, 1], [], []>} : vector<4x32xf32>, vector<32x256xf32>, vector<4x256xf32> -> vector<4x256xf32>
    %c0_30 = arith.constant 0 : index
    %c0_31 = arith.constant 0 : index
    %48 = vector.load %arg9[%c0_30, %c0_31] : memref<4x1xf32, #tpu.memory_space<vmem>>, vector<4x1xf32>
    %49 = vector.broadcast %48 : vector<4x1xf32> to vector<4x256xf32>
    %50 = arith.addf %47, %49 : vector<4x256xf32>
    %c3 = arith.constant 3 : index
    %c0_32 = arith.constant 0 : index
    %51 = vector.load %arg10[%c3, %c0_32] : memref<8x256xf32, #tpu.memory_space<vmem>>, vector<4x256xf32>
    tpu.vector_store %arg10[%c3, %c0_32], %50 {strides = array<i32>} : memref<8x256xf32, #tpu.memory_space<vmem>>, vector<4x256xf32>,
    return
  }
  func.func @transform_0(%arg0: i32) -> (i32, i32) {
    %c0_i32 = arith.constant 0 : i32
    %c0_i32_0 = arith.constant 0 : i32
    return %c0_i32, %arg0 : i32, i32
  }
  func.func @transform_1(%arg0: i32) -> (i32, i32) {
    %c0_i32 = arith.constant 0 : i32
    %c0_i32_0 = arith.constant 0 : i32
    %c0_i32_1 = arith.constant 0 : i32
    return %c0_i32, %c0_i32_0 : i32, i32
  }
  func.func @transform_2(%arg0: i32) -> (i32, i32) {
    %c0_i32 = arith.constant 0 : i32
    %c0_i32_0 = arith.constant 0 : i32
    %c0_i32_1 = arith.constant 0 : i32
    return %c0_i32, %c0_i32_0 : i32, i32
  }
  func.func @transform_3(%arg0: i32) -> (i32, i32) {
    %c0_i32 = arith.constant 0 : i32
    %c0_i32_0 = arith.constant 0 : i32
    %c0_i32_1 = arith.constant 0 : i32
    return %c0_i32, %c0_i32_0 : i32, i32
  }
  func.func @transform_4(%arg0: i32) -> (i32, i32) {
    %c0_i32 = arith.constant 0 : i32
    %c0_i32_0 = arith.constant 0 : i32
    %c0_i32_1 = arith.constant 0 : i32
    return %c0_i32, %c0_i32_0 : i32, i32
  }
  func.func @transform_5(%arg0: i32) -> (i32, i32) {
    %c0_i32 = arith.constant 0 : i32
    %c0_i32_0 = arith.constant 0 : i32
    %c0_i32_1 = arith.constant 0 : i32
    return %c0_i32, %c0_i32_0 : i32, i32
  }
  func.func @transform_6(%arg0: i32) -> (i32, i32) {
    %c0_i32 = arith.constant 0 : i32
    %c0_i32_0 = arith.constant 0 : i32
    %c0_i32_1 = arith.constant 0 : i32
    return %c0_i32, %c0_i32_0 : i32, i32
  }
  func.func @transform_7(%arg0: i32) -> (i32, i32) {
    %c0_i32 = arith.constant 0 : i32
    %c0_i32_0 = arith.constant 0 : i32
    %c0_i32_1 = arith.constant 0 : i32
    return %c0_i32, %c0_i32_0 : i32, i32
  }
  func.func @transform_8(%arg0: i32) -> (i32, i32) {
    %c0_i32 = arith.constant 0 : i32
    %c0_i32_0 = arith.constant 0 : i32
    %c0_i32_1 = arith.constant 0 : i32
    return %c0_i32, %c0_i32_0 : i32, i32
  }
  func.func @transform_9(%arg0: i32) -> (i32, i32) {
    %c0_i32 = arith.constant 0 : i32
    %c0_i32_0 = arith.constant 0 : i32
    return %c0_i32, %arg0 : i32, i32
  }
}

</mosaic_0001>

<bundles_post_ra>
// kernel: tpu_custom_call.1
= control target key start
LH: loop header
LB: loop body
LE: loop exit
PB: predicated region body
PF: predicated region fallthrough
CT: control target
= control target key end

     0   :  { %v444_v1 = vmov 0   ;;  %s582_s0 = inlined_call_operand.vmem [shape: f32[3,256], index: 0, kind: input, shape index: {}]   ;;  %s583_s1 = inlined_call_operand.<no memory space> [shape: f32[1,1], index: 1, kind: input, shape index: {}]   ;;  %s584_s2 = inlined_call_operand.vmem [shape: f32[3,1], index: 2, kind: input, shape index: {}]   ;;  %s585_s3 = inlined_call_operand.vmem [shape: f32[32,3], index: 3, kind: input, shape index: {}]   ;;  %s586_s4 = inlined_call_operand.vmem [shape: f32[32,1], index: 4, kind: input, shape index: {}]   ;;  %s587_s5 = inlined_call_operand.vmem [shape: f32[32,32], index: 5, kind: input, shape index: {}]   ;;  %s588_s6 = inlined_call_operand.vmem [shape: f32[32,1], index: 6, kind: input, shape index: {}]   ;;  %s589_s7 = inlined_call_operand.vmem [shape: f32[4,32], index: 7, kind: input, shape index: {}]   ;;  %s590_s8 = inlined_call_operand.vmem [shape: f32[4,1], index: 8, kind: input, shape index: {}]   ;;  %s591_s9 = inlined_call_operand.hbm [shape: f32[8,256], index: 9, kind: output, shape index: {}]  }
   0x1   :  { %v38_v0 = vld [vmem:[%s584_s2] sm:$0x7]  ;;  %415 = vset.pattern.permute.xlu0 %v444_v1  ;;  %416 = vset.pattern.permute.xlu1 %v444_v1 }
   0x2   :  { %15 = vsyncpa [#allocation4], 0  ;;  %41 = vperm.xlu0 %415, %v38_v0   ;;  %417 = vset.pattern.permute.xlu2 %v444_v1  ;;  %v98_v2 = vld [vmem:[%s586_s4 + $0x18] sm:$0xff]  ;;  %v212_v3 = vld [vmem:[%s588_s6 + $0x10] sm:$0xff]  ;;  %v445_v5 = vmov 839922192   ;;  %v36_v8 = vstv %s583_s1  ;;  %v84_v22 = vlaneseq }
   0x3   :  { %v314_v4 = vld [vmem:[%s590_s8] sm:$0xf]  ;;  %v44_v6 = vunpack.c.l.s4 %v445_v5  ;;  %v97_v10 = vld [vmem:[%s586_s4 + $0x10] sm:$0xff]  ;;  %v96_v17 = vld [vmem:[%s586_s4 + $0x8] sm:$0xff]  ;;  %v446_v25 = vmov 0.0   ;;  %vm81_vm11 = vcmask 1040384  }
   0x4   :  { %v34_v7 = vld [vmem:[%s582_s0] sm:$0x77]  ;;  %111 = vperm.xlu1 %416, %v97_v10   ;;  %v211_v27 = vld [vmem:[%s588_s6 + $0x8] sm:$0xff]  ;;  %vm86_vm12 = vcmp.lt.s32.totalorder %v84_v22, 256  ;;  %vm135_vm13 = vcmask 1042432   ;;  %vm122_vm14 = vcmask 23552  }
   0x5   :  { %v45_v9 = vunpack.c.0.s8 %v44_v6  ;;  %v37_v11 = vmul.f32 %v36_v8, %v34_v7  ;;  %v95_v28 = vld [vmem:[%s586_s4] sm:$0xff]  ;;  %v213_v32 = vld [vmem:[%s588_s6 + $0x18] sm:$0xff]  ;;  %v92_v35 = vld [vmem:[%s585_s3 + $0x8] sm:$0xff]  ;;  %vm234_vm15 = vcmask 261120   ;;  %s447_s21 = smov [#allocation3]   ;;  %s378_s22 = sshll.u32 %s591_s9, 4  ;;  %s379_s22 = int_to_ptr.hbm [resolvable:$true] %s378_s22 }
   0x6   :  { %101 = vperm.xlu2 %417, %v95_v28   ;;  %v91_v31 = vld [vmem:[%s585_s3] sm:$0xff]  ;;  %v93_v37 = vld [vmem:[%s585_s3 + $0x10] sm:$0xff]  ;;  %v94_v38 = vld [vmem:[%s585_s3 + $0x18] sm:$0xff]  ;;  %s376_s0 = sshll.u32 %s447_s21, 4  ;;  %s377_s0 = int_to_ptr.vmem [resolvable:$true] %s376_s0 }
   0x7   :  { %v210_v36 = vld [vmem:[%s588_s6] sm:$0xff]  ;;  %v208_v5 = vld [vmem:[%s587_s5 + $0x10] sm:$0xff]  ;;  %v209_v6 = vld [vmem:[%s587_s5 + $0x18] sm:$0xff] }
   0xa   :  { %116 = vperm.xlu0 %415, %v98_v2  }
   0xc   :  { %106 = vperm.xlu1 %416, %v96_v17  }
   0xe   :  { %231 = vperm.xlu2 %417, %v213_v32  }
  0x12   :  { %226 = vperm.xlu0 %415, %v212_v3   ;;  %v206_v3 = vld [vmem:[%s587_s5] sm:$0xff] }
  0x14   :  { %221 = vperm.xlu1 %416, %v211_v27  }
  0x16   :  { %216 = vperm.xlu2 %417, %v210_v36  }
  0x1a   :  { %317 = vperm.xlu0 %415, %v314_v4   ;;  %v207_v4 = vld [vmem:[%s587_s5 + $0x8] sm:$0xff] }
  0x60   :  { %v102_v54 = vpop.permute.xlu2 %101 }
  0x74   :  { %v42_v12 = vpop.permute.xlu0 %41 }
  0x75   :  { %v46_v13 = vperm.slane %v42_v12, %v45_v9 }
  0x76   :  { %v112_v43 = vpop.permute.xlu1 %111 }
  0x77   :  { %v48_v14 = vadd.f32 %v46_v13, %v37_v11  ;;  %v232_v13 = vpop.permute.xlu2 %231 }
  0x79   :  { %50 = vst [vmem:[#allocation1] ss:$2 sm:$0xff] %v48_v14  ;;  %vm57_vm0 = vcmp.ge.f32.partialorder %v48_v14, -1.0  ;;  %vm58_vm1 = vcmp.le.f32.partialorder %v48_v14, 1.0 }
  0x7a   :  { %v60_v15 = vsel %vm57_vm0, 1, %v444_v1  ;;  %v65_v16 = vsel %vm58_vm1, 1, %v444_v1  ;;  %vm59_vm2 = vmand %vm57_vm0, %vm58_vm1 }
  0x7b   :  { %v387_v18 = vrot.slane %v60_v15, 9  ;;  %v388_v19 = vrot.slane %v65_v16, 9  ;;  %v389_v20 = vrot.slane %v60_v15, 10  ;;  %v390_v21 = vrot.slane %v65_v16, 10 }
  0x7c   :  { %v117_v46 = vpop.permute.xlu0 %116 }
  0x7d   :  { %vm63_vm3 = vcmp.ne.s32.totalorder %v387_v18, 0  ;;  %vm68_vm4 = vcmp.ne.s32.totalorder %v388_v19, 0  ;;  %vm72_vm7 = vcmp.ne.s32.totalorder %v389_v20, 0  ;;  %vm76_vm8 = vcmp.ne.s32.totalorder %v390_v21, 0 }
  0x7e   :  { %vm64_vm5 = vmand %vm59_vm2, %vm63_vm3  ;;  %v107_v47 = vpop.permute.xlu1 %106 }
  0x7f   :  { %vm69_vm6 = vmand %vm64_vm5, %vm68_vm4 }
  0x80   :  { %v51_v23 = vld.sshfl [vmem:[#allocation1] sm:$0xff pattern:$0x75316420]  ;;  %v52_v24 = vld.sshfl [vmem:[#allocation1 + $0x8] sm:$0xff pattern:$0x75316420]  ;;  %vm73_vm9 = vmand %vm69_vm6, %vm72_vm7 }
  0x81   :  { %vm77_vm10 = vmand %vm73_vm9, %vm76_vm8  ;;  %119 = vst [vmem:[#allocation1] ss:$2 sm:$0xff] %v48_v14 }
  0x82   :  { %v78_v26 = vsel %vm77_vm10, 1.0, %v446_v25  ;;  %55 = vst [vmem:[#allocation3] sm:$0x7] %v51_v23 }
  0x83   :  { %v80_v29 = vrot.slane %v78_v26, 3  ;;  %56 = vst [vmem:[#allocation3 + $0x8] sm:$0x7] %v52_v24 }
  0x84   :  { %v227_v14 = vpop.permute.xlu0 %226 }
  0x85   :  { %v82_v30 = vsel %vm81_vm11, %v78_v26, %v80_v29  ;;  %v217_v26 = vpop.permute.xlu2 %216 }
  0x86   :  { %89 = vst.msk [vmem:[#allocation3 + $0x7] ss:$8 sm:$0x3] %vm86_vm12, %v82_v30  ;;  %v222_v21 = vpop.permute.xlu1 %221 }
  0x88   :  { %v120_v33 = vld.sshfl [vmem:[#allocation1] sm:$0xff pattern:$0x75316420]  ;;  %v121_v34 = vld.sshfl [vmem:[#allocation1 + $0x8] sm:$0xff pattern:$0x75316420] }
  0x89   :  { %391 = vmatpush.msk.msra.mxu0 %vm135_vm13, %v120_v33  ;;  %396 = vmatpush.msk.msra.mxu1 %vm135_vm13, %v121_v34 }
  0x8a   :  { %392 = vmatmul.msk.f32.vlgmr.msra.gmra.mxu0 %vm122_vm14, %v91_v31  ;;  %397 = vmatmul.msk.f32.vlgmr.msra.gmra.mxu1 %vm122_vm14, %v91_v31 }
  0x8c   :  { %v318_v36 = vpop.permute.xlu0 %317 }
  0x92   :  { %393 = vmatmul.msk.f32.gmra.mxu0 %vm122_vm14, %v92_v35  ;;  %398 = vmatmul.msk.f32.gmra.mxu1 %vm122_vm14, %v92_v35  ;;  %v313_v35 = vld [vmem:[%s589_s7] sm:$0xf] }
  0x9a   :  { %394 = vmatmul.msk.f32.gmra.mxu0 %vm122_vm14, %v93_v37  ;;  %399 = vmatmul.msk.f32.gmra.mxu1 %vm122_vm14, %v93_v37 }
  0xa2   :  { %395 = vmatmul.msk.f32.gmra.mxu0 %vm122_vm14, %v94_v38  ;;  %400 = vmatmul.msk.f32.gmra.mxu1 %vm122_vm14, %v94_v38 }
 0x107   :  { %v157_v39 = vpop.f32.mrf.mxu0  ;;  %v186_v40 = vpop.f32.mrf.mxu1 }
 0x108   :  { %v158_v59 = vadd.f32 %v157_v39, %v102_v54  ;;  %v187_v60 = vadd.f32 %v186_v40, %v102_v54 }
 0x10a   :  { %v198_v1 = vmax.f32 %v158_v59, 0.0  ;;  %v199_v2 = vmax.f32 %v187_v60, 0.0 }
 0x10f   :  { %v160_v41 = vpop.f32.mrf.mxu0  ;;  %v189_v42 = vpop.f32.mrf.mxu1 }
 0x110   :  { %v161_v55 = vadd.f32 %v160_v41, %v107_v47  ;;  %v190_v56 = vadd.f32 %v189_v42, %v107_v47 }
 0x112   :  { %v200_v63 = vmax.f32 %v161_v55, 0.0  ;;  %v201_v0 = vmax.f32 %v190_v56, 0.0 }
 0x117   :  { %v163_v44 = vpop.f32.mrf.mxu0  ;;  %v192_v45 = vpop.f32.mrf.mxu1 }
 0x118   :  { %v164_v50 = vadd.f32 %v163_v44, %v112_v43  ;;  %v193_v51 = vadd.f32 %v192_v45, %v112_v43 }
 0x11a   :  { %v202_v61 = vmax.f32 %v164_v50, 0.0  ;;  %v203_v62 = vmax.f32 %v193_v51, 0.0 }
 0x11f   :  { %v166_v48 = vpop.f32.mrf.mxu0  ;;  %v195_v49 = vpop.f32.mrf.mxu1 }
 0x120   :  { %v167_v52 = vadd.f32 %v166_v48, %v117_v46  ;;  %v196_v53 = vadd.f32 %v195_v49, %v117_v46 }
 0x122   :  { %v204_v57 = vmax.f32 %v167_v52, 0.0  ;;  %v205_v58 = vmax.f32 %v196_v53, 0.0 }
 0x124   :  { %259 = vmatpush.msra.mxu2 %v204_v57  ;;  %288 = vmatpush.msra.mxu3 %v205_v58 }
 0x126   :  { %260 = vmatpush.msra.mxu2 %v202_v61  ;;  %289 = vmatpush.msra.mxu3 %v203_v62 }
 0x128   :  { %261 = vmatpush.msra.mxu2 %v200_v63  ;;  %290 = vmatpush.msra.mxu3 %v201_v0 }
 0x12a   :  { %262 = vmatpush.msra.mxu2 %v198_v1  ;;  %291 = vmatpush.msra.mxu3 %v199_v2 }
 0x12b   :  { %401 = vmatmul.msk.f32.vlgmr.msra.gmra.mxu2 %vm234_vm15, %v206_v3  ;;  %405 = vmatmul.msk.f32.vlgmr.msra.gmra.mxu3 %vm234_vm15, %v206_v3 }
 0x133   :  { %402 = vmatmul.msk.f32.gmra.mxu2 %vm234_vm15, %v207_v4  ;;  %406 = vmatmul.msk.f32.gmra.mxu3 %vm234_vm15, %v207_v4 }
 0x13b   :  { %403 = vmatmul.msk.f32.gmra.mxu2 %vm234_vm15, %v208_v5  ;;  %407 = vmatmul.msk.f32.gmra.mxu3 %vm234_vm15, %v208_v5 }
 0x143   :  { %404 = vmatmul.msk.f32.gmra.mxu2 %vm234_vm15, %v209_v6  ;;  %408 = vmatmul.msk.f32.gmra.mxu3 %vm234_vm15, %v209_v6 }
 0x1ae   :  { %v264_v7 = vpop.f32.mrf.mxu2  ;;  %v293_v8 = vpop.f32.mrf.mxu3 }
 0x1af   :  { %v265_v27 = vadd.f32 %v264_v7, %v217_v26  ;;  %v294_v28 = vadd.f32 %v293_v8, %v217_v26 }
 0x1b1   :  { %v305_v33 = vmax.f32 %v265_v27, 0.0  ;;  %v306_v34 = vmax.f32 %v294_v28, 0.0 }
 0x1b6   :  { %v267_v9 = vpop.f32.mrf.mxu2  ;;  %v296_v10 = vpop.f32.mrf.mxu3 }
 0x1b7   :  { %v268_v22 = vadd.f32 %v267_v9, %v222_v21  ;;  %v297_v23 = vadd.f32 %v296_v10, %v222_v21 }
 0x1b9   :  { %v307_v31 = vmax.f32 %v268_v22, 0.0  ;;  %v308_v32 = vmax.f32 %v297_v23, 0.0 }
 0x1be   :  { %v270_v11 = vpop.f32.mrf.mxu2  ;;  %v299_v12 = vpop.f32.mrf.mxu3 }
 0x1bf   :  { %v271_v17 = vadd.f32 %v270_v11, %v227_v14  ;;  %v300_v18 = vadd.f32 %v299_v12, %v227_v14 }
 0x1c1   :  { %v309_v29 = vmax.f32 %v271_v17, 0.0  ;;  %v310_v30 = vmax.f32 %v300_v18, 0.0 }
 0x1c6   :  { %v273_v15 = vpop.f32.mrf.mxu2  ;;  %v302_v16 = vpop.f32.mrf.mxu3 }
 0x1c7   :  { %v274_v19 = vadd.f32 %v273_v15, %v232_v13  ;;  %v303_v20 = vadd.f32 %v302_v16, %v232_v13 }
 0x1c9   :  { %v311_v24 = vmax.f32 %v274_v19, 0.0  ;;  %v312_v25 = vmax.f32 %v303_v20, 0.0 }
 0x1cb   :  { %335 = vmatpush.msrb.mxu0 %v311_v24  ;;  %355 = vmatpush.msrb.mxu1 %v312_v25 }
 0x1cd   :  { %336 = vmatpush.msrb.mxu0 %v309_v29  ;;  %356 = vmatpush.msrb.mxu1 %v310_v30 }
 0x1cf   :  { %337 = vmatpush.msrb.mxu0 %v307_v31  ;;  %357 = vmatpush.msrb.mxu1 %v308_v32 }
 0x1d1   :  { %338 = vmatpush.msrb.mxu0 %v305_v33  ;;  %358 = vmatpush.msrb.mxu1 %v306_v34 }
 0x1d2   :  { %409 = vmatmul.msk.f32.vlgmr.msrb.gmra.mxu0 %vm234_vm15, %v313_v35  ;;  %410 = vmatmul.msk.f32.vlgmr.msrb.gmra.mxu1 %vm234_vm15, %v313_v35 }
 0x24f   :  { %v340_v37 = vpop.f32.mrf.mxu0  ;;  %v360_v38 = vpop.f32.mrf.mxu1 }
 0x250   :  { %v341_v39 = vadd.f32 %v340_v37, %v318_v36  ;;  %v361_v40 = vadd.f32 %v360_v38, %v318_v36 }
 0x252   :  { %v365_v41 = vrot.slane %v341_v39, 5  ;;  %v366_v42 = vrot.slane %v361_v40, 5 }
 0x254   :  { %369 = vst [vmem:[#allocation3] sm:$0x78] %v365_v41 }
 0x255   :  { %370 = vst [vmem:[#allocation3 + $0x8] sm:$0x78] %v366_v42 }
 0x256   :  { %381 = dma.vmem_to_hbm [thread:$0]  %s377_s0, 256, %s379_s22, [#allocation4]  }
 0x257   :  { %442 = dma.done.wait [#allocation4], 256  }
 0x258   :  { %443 = vsyncadd [#allocation4], 4294967040 }
 0x259   :  { %386 = vsyncpa [#allocation4], 1 }

</bundles_post_ra>
